<compile_context>
chip_gen: v5e
topology: v5e:2x2
jax: 0.10.0
libtpu: 0.0.40
codegen_flags: <defaults>
</compile_context>

<pallas_src>
import functools

import jax
import jax.numpy as jnp
import numpy as np
from jax import lax
from jax.experimental import pallas as pl
from jax.experimental.pallas import tpu as pltpu


def _fused_multihead_kernel(x_ref, wqkv_ref, bqkv_ref, o_ref, *, num_heads, d_out):
    # One batch element per grid step; heads and Q/K/V are fused along the lane axis.
    x = x_ref[0]                       # (T, d_in)      bf16
    wqkv = wqkv_ref[...]               # (d_in, N_pad)  bf16
    bqkv = bqkv_ref[...]               # (1, N_pad)     f32

    # Single fused projection for all heads and Q/K/V (bf16 MXU inputs, f32 accumulation).
    qkv = jnp.dot(x, wqkv, preferred_element_type=jnp.float32) + bqkv   # (T, N_pad) f32

    hd = num_heads * d_out
    T = x.shape[0]

    # Fold the 1/sqrt(d_out) scale into q: O(T*H*d_out) instead of O(T^2) per head.
    q = qkv[:, 0:hd] * jnp.float32(1.0 / (d_out ** 0.5))
    k = qkv[:, hd:2 * hd]
    v = qkv[:, 2 * hd:3 * hd]

    # causal mask = triu(ones, diagonal=1): mask out key positions j > query i
    row = lax.broadcasted_iota(jnp.int32, (T, T), 0)
    col = lax.broadcasted_iota(jnp.int32, (T, T), 1)
    causal = col > row

    ctxs = []
    for h in range(num_heads):         # small static H -> trace-time unroll
        qh = q[:, h * d_out:(h + 1) * d_out].astype(jnp.bfloat16)
        kh = k[:, h * d_out:(h + 1) * d_out].astype(jnp.bfloat16)
        vh = v[:, h * d_out:(h + 1) * d_out].astype(jnp.bfloat16)

        s = jnp.dot(qh, kh.T, preferred_element_type=jnp.float32)       # (T, T) f32
        s = jnp.where(causal, -jnp.inf, s)

        # NOTE: the reference module calls torch.softmax(..., dim=1) on a (b, Tq, Tk)
        # tensor, i.e. softmax over the *query* axis -> axis 0 of this (Tq, Tk) tile.
        # (Every column has at least one unmasked entry, so no NaNs.)  Softmax math in f32.
        m = jnp.max(s, axis=0, keepdims=True)
        e = jnp.exp(s - m)
        w = e * pl.reciprocal(jnp.sum(e, axis=0, keepdims=True), approx=True)  # EUP recip

        # dropout: nn.Dropout is the identity in eval/inference mode.
        # TODO(synk): training-mode dropout (stateful PRNG + rescale) not implemented.

        ctxs.append(jnp.dot(w.astype(jnp.bfloat16), vh,
                            preferred_element_type=jnp.float32))        # (T, d_out) f32

    # Final (T, H*d_out) layout assembled in VMEM -> one contiguous store per batch element.
    o_ref[0] = jnp.concatenate(ctxs, axis=-1).astype(o_ref.dtype)


def multihead_attention(x, wq, bq, wk, bk, wv, bv):
    """x: (B, T, d_in); wq/wk/wv: (H, d_in, d_out); bq/bk/bv: (H, 1, d_out)."""
    B, T, d_in = x.shape
    H, _, d_out = wq.shape
    hd = H * d_out

    # --- pack the 3*H per-head Linear layers into one wide QKV projection ----------------
    # column layout: [ Q(h0..hH-1) | K(h0..hH-1) | V(h0..hH-1) ], head-major inside each.
    def pack_w(w):   # (H, d_in, d_out) -> (d_in, H*d_out)
        return jnp.transpose(w, (1, 0, 2)).reshape(d_in, hd)

    wqkv = jnp.concatenate([pack_w(wq), pack_w(wk), pack_w(wv)], axis=-1)       # (d_in, 3*hd)
    bqkv = jnp.concatenate([bq.reshape(1, hd), bk.reshape(1, hd),
                            bv.reshape(1, hd)], axis=-1)                         # (1, 3*hd)

    # Pad projection N to a multiple of 128: full-lane, MXU-friendly on v5e (128-wide)
    # and v6e/v7x (256-wide) alike.
    n = 3 * hd
    n_pad = ((n + 127) // 128) * 128
    if n_pad > n:
        wqkv = jnp.pad(wqkv, ((0, 0), (0, n_pad - n)))
        bqkv = jnp.pad(bqkv, ((0, 0), (0, n_pad - n)))

    # bf16 MXU inputs; accumulation, bias add and softmax stay f32 (v5e has no bf16 VPU/EUP).
    x_bf = x.astype(jnp.bfloat16)
    wqkv_bf = wqkv.astype(jnp.bfloat16)
    bqkv_f32 = bqkv.astype(jnp.float32)

    kernel = functools.partial(_fused_multihead_kernel, num_heads=H, d_out=d_out)

    # TODO(synk): for large T, tile the query axis (block (1, Tq, d_in)/(1, Tq, hd)) and
    # stream keys flash-style to stay within v7x's 64 MiB VMEM.
    return pl.pallas_call(
        kernel,
        out_shape=jax.ShapeDtypeStruct((B, T, hd), x.dtype),
        grid_spec=pltpu.PrefetchScalarGridSpec(
            num_scalar_prefetch=0,
            grid=(B,),                                   # parallel axis of extent >= 2 (v7x 2 TCs)
            in_specs=[
                pl.BlockSpec((1, T, d_in), lambda b: (b, 0, 0)),
                pl.BlockSpec((d_in, n_pad), lambda b: (0, 0)),   # constant index -> stays resident
                pl.BlockSpec((1, n_pad), lambda b: (0, 0)),
            ],
            out_specs=pl.BlockSpec((1, T, hd), lambda b: (b, 0, 0)),
        ),
        compiler_params=pltpu.CompilerParams(
            dimension_semantics=("parallel",),
            vmem_limit_bytes=32 * 1024 * 1024,           # safe on v5e/v6e (128 MiB) and v7x (64 MiB)
        ),
    )(x_bf, wqkv_bf, bqkv_f32)


def _reference(x, wq, bq, wk, bk, wv, bv):
    """Pure-JAX f32 re-implementation of MultiHead.forward (eval mode)."""
    B, T, _ = x.shape
    H, _, d_out = wq.shape
    outs = []
    mask = jnp.triu(jnp.ones((T, T), dtype=bool), k=1)
    for h in range(H):
        q = x @ wq[h] + bq[h]
        k = x @ wk[h] + bk[h]
        v = x @ wv[h] + bv[h]
        s = jnp.einsum('bqd,bkd->bqk', q, k)
        s = jnp.where(mask[None], -jnp.inf, s)
        w = jax.nn.softmax(s / jnp.sqrt(jnp.float32(d_out)), axis=1)   # dim=1 == query axis
        outs.append(jnp.einsum('bqk,bkd->bqd', w, v))
    return jnp.concatenate(outs, axis=-1)


if __name__ == "__main__":
    B, T, D_IN, D_OUT, H = 2, 8, 32, 16, 2   # context_length = T = 8

    key = jax.random.PRNGKey(0)
    kx, kq, kbq, kk, kbk, kv, kbv = jax.random.split(key, 7)

    x = jax.random.normal(kx, (B, T, D_IN), dtype=jnp.float32)

    # Deterministic synthetic parameters (one independent Linear per head, bias=True).
    scale = 1.0 / np.sqrt(D_IN)
    wq = jax.random.uniform(kq, (H, D_IN, D_OUT), jnp.float32, -scale, scale)
    wk = jax.random.uniform(kk, (H, D_IN, D_OUT), jnp.float32, -scale, scale)
    wv = jax.random.uniform(kv, (H, D_IN, D_OUT), jnp.float32, -scale, scale)
    bq = jax.random.uniform(kbq, (H, 1, D_OUT), jnp.float32, -scale, scale)
    bk = jax.random.uniform(kbk, (H, 1, D_OUT), jnp.float32, -scale, scale)
    bv = jax.random.uniform(kbv, (H, 1, D_OUT), jnp.float32, -scale, scale)

    out = multihead_attention(x, wq, bq, wk, bk, wv, bv)
    out = jax.block_until_ready(out)

    ref = _reference(x, wq, bq, wk, bk, wv, bv)
    assert out.shape == (B, T, H * D_OUT), out.shape
    # Tolerance loosened vs the pure-f32 reference because MXU dot inputs are bf16
    # (f32 accumulation); still far tighter than any structural error would produce.
    np.testing.assert_allclose(np.asarray(out), np.asarray(ref), rtol=5e-2, atol=5e-2)

    print("KERNEL_OK")
</pallas_src>

<mosaic_0001>
module attributes {stable_mosaic.version = 11 : i64} {
  func.func @_fused_multihead_kernel(%arg0: i32, %arg1: memref<1x8x32xbf16, #tpu.memory_space<vmem>>, %arg2: memref<32x128xbf16, #tpu.memory_space<vmem>>, %arg3: memref<1x128xf32, #tpu.memory_space<vmem>>, %arg4: memref<1x8x32xf32, #tpu.memory_space<vmem>>) attributes {dimension_semantics = [#tpu.dimension_semantics<parallel>], iteration_bounds = array<i64: 2>, scalar_prefetch = 0 : i64, scratch_operands = 0 : i64, tpu.core_type = #tpu.core_type<tc>, window_params = [{transform_indices = @transform_0, window_bounds = array<i64: 1, 8, 32>}, {pipeline_mode = #tpu.pipeline_mode<synchronous>, transform_indices = @transform_1, window_bounds = array<i64: 32, 128>}, {pipeline_mode = #tpu.pipeline_mode<synchronous>, transform_indices = @transform_2, window_bounds = array<i64: 1, 128>}, {transform_indices = @transform_3, window_bounds = array<i64: 1, 8, 32>}]} {
    %c0 = arith.constant 0 : index
    %c0_0 = arith.constant 0 : index
    %c0_1 = arith.constant 0 : index
    %0 = vector.load %arg1[%c0, %c0_0, %c0_1] : memref<1x8x32xbf16, #tpu.memory_space<vmem>>, vector<1x8x32xbf16>
    %1 = vector.shape_cast %0 : vector<1x8x32xbf16> to vector<8x32xbf16>
    %c0_2 = arith.constant 0 : index
    %c0_3 = arith.constant 0 : index
    %2 = vector.load %arg2[%c0_2, %c0_3] : memref<32x128xbf16, #tpu.memory_space<vmem>>, vector<32x128xbf16>
    %c0_4 = arith.constant 0 : index
    %c0_5 = arith.constant 0 : index
    %3 = vector.load %arg3[%c0_4, %c0_5] : memref<1x128xf32, #tpu.memory_space<vmem>>, vector<1x128xf32>
    %cst = arith.constant dense<0.000000e+00> : vector<8x128xf32>
    %4 = tpu.matmul %1, %2, %cst {dimension_numbers = #tpu.dot_dimension_numbers<[1], [0], [0], [1], [0, 0, 1, 1], [], []>} : vector<8x32xbf16>, vector<32x128xbf16>, vector<8x128xf32> -> vector<8x128xf32>
    %5 = vector.broadcast %3 : vector<1x128xf32> to vector<8x128xf32>
    %6 = arith.addf %4, %5 : vector<8x128xf32>
    %7 = vector.extract_strided_slice %6 {offsets = [0, 0], sizes = [8, 32], strides = [1, 1]} : vector<8x128xf32> to vector<8x32xf32>
    %cst_6 = arith.constant 2.500000e-01 : f32
    %8 = vector.broadcast %cst_6 : f32 to vector<8x32xf32>
    %9 = arith.mulf %7, %8 : vector<8x32xf32>
    %10 = vector.extract_strided_slice %6 {offsets = [0, 32], sizes = [8, 32], strides = [1, 1]} : vector<8x128xf32> to vector<8x32xf32>
    %11 = vector.extract_strided_slice %6 {offsets = [0, 64], sizes = [8, 32], strides = [1, 1]} : vector<8x128xf32> to vector<8x32xf32>
    %12 = tpu.iota {dimensions = array<i32: 0>} : vector<8x8xi32>
    %13 = tpu.iota {dimensions = array<i32: 1>} : vector<8x8xi32>
    %14 = arith.cmpi sgt, %13, %12 : vector<8x8xi32>
    %15 = vector.extract_strided_slice %9 {offsets = [0, 0], sizes = [8, 16], strides = [1, 1]} : vector<8x32xf32> to vector<8x16xf32>
    %16 = arith.truncf %15 : vector<8x16xf32> to vector<8x16xbf16>
    %17 = vector.extract_strided_slice %10 {offsets = [0, 0], sizes = [8, 16], strides = [1, 1]} : vector<8x32xf32> to vector<8x16xf32>
    %18 = arith.truncf %17 : vector<8x16xf32> to vector<8x16xbf16>
    %19 = vector.extract_strided_slice %11 {offsets = [0, 0], sizes = [8, 16], strides = [1, 1]} : vector<8x32xf32> to vector<8x16xf32>
    %20 = arith.truncf %19 : vector<8x16xf32> to vector<8x16xbf16>
    %21 = tpu.transpose %18, [1, 0] : vector<8x16xbf16> -> vector<16x8xbf16>
    %cst_7 = arith.constant dense<0.000000e+00> : vector<8x8xf32>
    %22 = tpu.matmul %16, %21, %cst_7 {dimension_numbers = #tpu.dot_dimension_numbers<[1], [0], [0], [1], [0, 0, 1, 1], [], []>} : vector<8x16xbf16>, vector<16x8xbf16>, vector<8x8xf32> -> vector<8x8xf32>
    %cst_8 = arith.constant 0xFF800000 : f32
    %23 = vector.broadcast %cst_8 : f32 to vector<8x8xf32>
    %24 = arith.select %14, %23, %22 : vector<8x8xi1>, vector<8x8xf32>
    %cst_9 = arith.constant dense<0xFF800000> : vector<8xf32>
    %25 = vector.multi_reduction <maximumf>, %24, %cst_9 [0] : vector<8x8xf32> to vector<8xf32>
    %26 = vector.shape_cast %25 : vector<8xf32> to vector<1x8xf32>
    %27 = vector.broadcast %26 : vector<1x8xf32> to vector<8x8xf32>
    %28 = arith.subf %24, %27 : vector<8x8xf32>
    %29 = math.exp %28 : vector<8x8xf32>
    %cst_10 = arith.constant dense<0.000000e+00> : vector<8xf32>
    %30 = vector.multi_reduction <add>, %29, %cst_10 [0] : vector<8x8xf32> to vector<8xf32>
    %31 = vector.shape_cast %30 : vector<8xf32> to vector<1x8xf32>
    %32 = tpu.reciprocal %31 {approx = true} : vector<1x8xf32> -> vector<1x8xf32>
    %33 = vector.broadcast %32 : vector<1x8xf32> to vector<8x8xf32>
    %34 = arith.mulf %29, %33 : vector<8x8xf32>
    %35 = arith.truncf %34 : vector<8x8xf32> to vector<8x8xbf16>
    %cst_11 = arith.constant dense<0.000000e+00> : vector<8x16xf32>
    %36 = tpu.matmul %35, %20, %cst_11 {dimension_numbers = #tpu.dot_dimension_numbers<[1], [0], [0], [1], [0, 0, 1, 1], [], []>} : vector<8x8xbf16>, vector<8x16xbf16>, vector<8x16xf32> -> vector<8x16xf32>
    %37 = vector.extract_strided_slice %9 {offsets = [0, 16], sizes = [8, 16], strides = [1, 1]} : vector<8x32xf32> to vector<8x16xf32>
    %38 = arith.truncf %37 : vector<8x16xf32> to vector<8x16xbf16>
    %39 = vector.extract_strided_slice %10 {offsets = [0, 16], sizes = [8, 16], strides = [1, 1]} : vector<8x32xf32> to vector<8x16xf32>
    %40 = arith.truncf %39 : vector<8x16xf32> to vector<8x16xbf16>
    %41 = vector.extract_strided_slice %11 {offsets = [0, 16], sizes = [8, 16], strides = [1, 1]} : vector<8x32xf32> to vector<8x16xf32>
    %42 = arith.truncf %41 : vector<8x16xf32> to vector<8x16xbf16>
    %43 = tpu.transpose %40, [1, 0] : vector<8x16xbf16> -> vector<16x8xbf16>
    %cst_12 = arith.constant dense<0.000000e+00> : vector<8x8xf32>
    %44 = tpu.matmul %38, %43, %cst_12 {dimension_numbers = #tpu.dot_dimension_numbers<[1], [0], [0], [1], [0, 0, 1, 1], [], []>} : vector<8x16xbf16>, vector<16x8xbf16>, vector<8x8xf32> -> vector<8x8xf32>
    %cst_13 = arith.constant 0xFF800000 : f32
    %45 = vector.broadcast %cst_13 : f32 to vector<8x8xf32>
    %46 = arith.select %14, %45, %44 : vector<8x8xi1>, vector<8x8xf32>
    %cst_14 = arith.constant dense<0xFF800000> : vector<8xf32>
    %47 = vector.multi_reduction <maximumf>, %46, %cst_14 [0] : vector<8x8xf32> to vector<8xf32>
    %48 = vector.shape_cast %47 : vector<8xf32> to vector<1x8xf32>
    %49 = vector.broadcast %48 : vector<1x8xf32> to vector<8x8xf32>
    %50 = arith.subf %46, %49 : vector<8x8xf32>
    %51 = math.exp %50 : vector<8x8xf32>
    %cst_15 = arith.constant dense<0.000000e+00> : vector<8xf32>
    %52 = vector.multi_reduction <add>, %51, %cst_15 [0] : vector<8x8xf32> to vector<8xf32>
    %53 = vector.shape_cast %52 : vector<8xf32> to vector<1x8xf32>
    %54 = tpu.reciprocal %53 {approx = true} : vector<1x8xf32> -> vector<1x8xf32>
    %55 = vector.broadcast %54 : vector<1x8xf32> to vector<8x8xf32>
    %56 = arith.mulf %51, %55 : vector<8x8xf32>
    %57 = arith.truncf %56 : vector<8x8xf32> to vector<8x8xbf16>
    %cst_16 = arith.constant dense<0.000000e+00> : vector<8x16xf32>
    %58 = tpu.matmul %57, %42, %cst_16 {dimension_numbers = #tpu.dot_dimension_numbers<[1], [0], [0], [1], [0, 0, 1, 1], [], []>} : vector<8x8xbf16>, vector<8x16xbf16>, vector<8x16xf32> -> vector<8x16xf32>
    %59 = tpu.concatenate %36, %58 in 1 : vector<8x16xf32>, vector<8x16xf32> -> vector<8x32xf32>
    %c0_17 = arith.constant 0 : index
    %c0_18 = arith.constant 0 : index
    %c0_19 = arith.constant 0 : index
    %60 = vector.load %arg4[%c0_17, %c0_18, %c0_19] : memref<1x8x32xf32, #tpu.memory_space<vmem>>, vector<1x8x32xf32>
    %61 = vector.shape_cast %60 : vector<1x8x32xf32> to vector<8x32xf32>
    %62 = vector.shape_cast %59 : vector<8x32xf32> to vector<1x8x32xf32>
    tpu.vector_store %arg4[%c0_17, %c0_18, %c0_19], %62 {strides = array<i32>} : memref<1x8x32xf32, #tpu.memory_space<vmem>>, vector<1x8x32xf32>,
    return
  }
  func.func @transform_0(%arg0: i32) -> (i32, i32, i32) {
    %c0_i32 = arith.constant 0 : i32
    %c0_i32_0 = arith.constant 0 : i32
    %c0_i32_1 = arith.constant 0 : i32
    return %arg0, %c0_i32, %c0_i32_0 : i32, i32, i32
  }
  func.func @transform_1(%arg0: i32) -> (i32, i32) {
    %c0_i32 = arith.constant 0 : i32
    %c0_i32_0 = arith.constant 0 : i32
    %c0_i32_1 = arith.constant 0 : i32
    return %c0_i32, %c0_i32_0 : i32, i32
  }
  func.func @transform_2(%arg0: i32) -> (i32, i32) {
    %c0_i32 = arith.constant 0 : i32
    %c0_i32_0 = arith.constant 0 : i32
    %c0_i32_1 = arith.constant 0 : i32
    return %c0_i32, %c0_i32_0 : i32, i32
  }
  func.func @transform_3(%arg0: i32) -> (i32, i32, i32) {
    %c0_i32 = arith.constant 0 : i32
    %c0_i32_0 = arith.constant 0 : i32
    %c0_i32_1 = arith.constant 0 : i32
    return %arg0, %c0_i32, %c0_i32_0 : i32, i32, i32
  }
}

</mosaic_0001>

<bundles_post_ra>
// kernel: tpu_custom_call.1
= control target key start
LH: loop header
LB: loop body
LE: loop exit
PB: predicated region body
PF: predicated region fallthrough
CT: control target
= control target key end

     0   :  { %8 = vsyncpa [#allocation3], 0  ;;  %s904_s0 = inlined_call_operand.hbm [shape: bf16[2,8,32], index: 0, kind: input, shape index: {}]   ;;  %s905_s1 = inlined_call_operand.hbm [shape: bf16[32,128], index: 1, kind: input, shape index: {}]   ;;  %s906_s2 = inlined_call_operand.vmem [shape: f32[1,128], index: 2, kind: input, shape index: {}]   ;;  %s907_s3 = inlined_call_operand.hbm [shape: f32[2,8,32], index: 3, kind: output, shape index: {}]  }
   0x1   :  { %10 = vsyncpa [#allocation3 + $0x1], 0 }
   0x2   :  { %11 = vsyncpa [#allocation6], 0 }
   0x3   :  { %12 = vsyncpa [#allocation4], 0 }
   0x4   :  { %14 = vsyncpa [#allocation4 + $0x1], 0  ;;  %s751_s12 = smov 0   ;;  %s753_s13 = smov 0  }
   0x5   :  { %s755_s14 = smov 0   ;;  %s757_s15 = smov 0  }
   0x6 LB: > { %s130_s18 = sshll.u32 %s905_s1, 4  ;;  %s775_s19 = sadd.s32 4294967295, %s720_s15   ;;  %s720_s15 = sphi %s757_s15, %s917_s15   ;;  %s716_s14 = sphi %s755_s14, %s916_s14   ;;  %s712_s13 = sphi %s753_s13, %s915_s13   ;;  %s708_s12 = sphi %s751_s12, %s914_s12   ;;  %s131_s18 = int_to_ptr.hbm [resolvable:$true] %s130_s18 }
   0x7   : > { %p488_p0 = scmp.ge.s32.totalorder %s720_s15, 1  ;;  %p41_p1 = scmp.eq.s32.totalorder %s775_s19, 0 }
   0x8   : > { %p119_p2 = scmp.lt.s32.totalorder %s720_s15, 3  ;;  %s722_s21 = smov [#allocation5]  }
   0x9   : > { %s132_s22 = sshll.u32 %s722_s21, 4  ;;  %s723_s23 = smov 64   ;;  %s133_s22 = int_to_ptr.vmem [resolvable:$true] %s132_s22 }
   0xa   : > { %p780_p3 = pnand %p488_p0, %p119_p2  ;;  %s724_s24 = smov 4  }
   0xb   : > { %s487_s25 = sadd.s32 4294967294, %s720_s15   ;;  %s791_s26 = sadd.s32 1, %s720_s15  }
   0xc   : > { %p524_p4 = pneg %p780_p3  ;;  %s27_s27 = sadd.s32 1, %s716_s14 }
   0xd   : > { %s24_s28 = ssub.s32 %s720_s15, %s791_s26  ;;  %p34_p7 = scmp.ne.s32.totalorder %s716_s14, %s712_s13 }
   0xe   : > { %p525_p6 = pnand %p524_p4, %p41_p1  ;;  %p25_p8 = scmp.eq.s32.totalorder %s24_s28, 0 }
   0xf   : > { %p35_p9 = scmp.eq.s32.totalorder %s720_s15, 0  ;;  %p40_p10 = scmp.ne.s32.totalorder %s712_s13, %s708_s12 }
  0x10   : > { %527 = dma.hbm_to_vmem [thread:$0]  (!%p525_p6), %s131_s18, 256, %s133_s22, [#allocation6], %s723_s23, %s723_s23, %s724_s24  }
  0x11   : > { %p106_p11 = scmp.eq.s32.totalorder %s775_s19, 1  ;;  %p807_p12 = por %p41_p1, %p40_p10 }
  0x12   : > { %s803_s29 = scalar_select %p25_p8, %s716_s14, %s27_s27  }
  0x13   : > { %p811_p13 = por %p106_p11, %p34_p7  ;;  %p112_p0 = scmp.eq.s32.totalorder %s487_s25, 1 }
  0x14   : > { %p36_p2 = por %p35_p9, %p34_p7  ;;  %s149_s5 = sand.u32 1, %s716_s14  }
  0x15   : > { %p816_p4 = por %p112_p0, %p40_p10  ;;  %p537_p6 = scmp.lt.s32.totalorder %s720_s15, 2 }
  0x16   : > { %s491_s7 = sshll.u32 %s149_s5, 2  ;;  %s492_s8 = sshll.u32 %s720_s15, 2 }
  0x17   : > { %s157_s11 = scalar_lea.hbm %s904_s0, %s492_s8  ;;  %s153_s17 = scalar_lea.vmem [#allocation2], %s491_s7 }
  0x18   : > { %s159_s16 = sshll.u32 %s157_s11, 4  ;;  %s161_s18 = sshll.u32 %s153_s17, 4  ;;  %s160_s16 = int_to_ptr.hbm [resolvable:$true] %s159_s16  ;;  %s162_s18 = int_to_ptr.vmem [resolvable:$true] %s161_s18 }
  0x19   : > { %p825_p8 = pnand %p537_p6, %p36_p2  ;;  %s150_s22 = scalar_lea.sflag [#allocation3], %s149_s5 }
  0x1a   : > { %s620_s23 = sshra.s32 %s160_s16, 4  ;;  %s627_s28 = scalar_lea.hbm %s904_s0, 8  ;;  %s621_s23 = int_to_ptr.hbm [resolvable:$true] %s620_s23 }
  0x1b   : > { %s622_s24 = scalar_lea.hbm %s621_s23, 4  ;;  %p624_p9 = pneg %p825_p8 }
  0x1c   : > { %p623_p7 = scmp.ne.s32.totalorder %s621_s23, %s622_s24  ;;  %p628_p0 = scmp.lt.s32.totalorder %s621_s23, %s904_s0 }
  0x1d   : > { %p629_p2 = scmp.lt.s32.totalorder %s627_s28, %s622_s24 }
  0x1e   : > { %p625_p10 = pnand %p624_p9, %p623_p7 }
  0x1f   : > { %p630_p6 = por %p629_p2, %p628_p0 }
  0x20   : > { %p626_p11 = pneg %p625_p10 }
  0x22   : > { %p631_p5 = pnand %p630_p6, %p626_p11 }
  0x24   : > { %634 = shalt.err (!%p631_p5)
}
  0x25   : > { %531 = dma.hbm_to_vmem [thread:$0]  (!%p825_p8), %s160_s16, 64, %s162_s18, %s150_s22  }
  0x26   : > { %170 = sbr.rel (%p780_p3) target bundleno = 725 (0x2d5), region = 32  ;;  %s842_s5 = sand.u32 (!%p780_p3), 1, %s712_s13  }
  0x27   : > { %s494_s9 = sshll.u32 (!%p780_p3), %s842_s5, 2  ;;  %s173_s10 = scalar_lea.sflag (!%p780_p3), [#allocation3], %s842_s5 }
  0x28   : > { %s176_s11 = scalar_lea.vmem (!%p780_p3), [#allocation2], %s494_s9 }
  0x2b   : > { %695 = dma.done.wait (%p807_p12), %s173_s10, 64  }
  0x2c   : > { %697 = vsyncadd (%p807_p12), %s173_s10, 4294967232 }
  0x2d   : > { %699 = dma.done.wait (%p41_p1), [#allocation6], 256  }
  0x2e   : > { %701 = vsyncadd (%p41_p1), [#allocation6], 4294967040  ;;  %v515_v0 = vld [vmem:[#allocation5 + $0x8] sm:$0xff]  ;;  %v514_v1 = vld [vmem:[#allocation5] sm:$0xff]  ;;  %vm227_vm0 = vcmask 261120   ;;  %s725_s30 = smov 48   ;;  %v245_v19 = vlaneseq }
  0x2f   : > { %237 = vmatpush.bf16.msra.mxu0 %v515_v0  ;;  %v206_v2 = vld [vmem:[%s176_s11] sm:$0xf]  ;;  %s726_s17 = smov 96   ;;  %s727_s18 = smov 112   ;;  %vm255_vm1 = vcmask 130048   ;;  %vm302_vm2 = vcmask 1043456  }
  0x30   : > { %v581_v3 = vld [vmem:[%s906_s2] ss:$0 sm:$0xff]  ;;  %s728_s21 = smov 80   ;;  %s729_s22 = smov 64   ;;  %v246_v20 = vshrl.u32 %v245_v19, 7  ;;  %v248_v21 = vand.u32 127, %v245_v19 }
  0x31   : > { %vm276_vm4 = vcmask 64512   ;;  %s730_s23 = smov 16   ;;  %s496_s24 = sshll.u32 %s842_s5, 3 }
  0x32   : > { %vm249_vm3 = vcmp.gt.s32.totalorder %v248_v21, %v246_v20  ;;  %s511_s25 = sshll.u32 %s775_s19, 3  ;;  %s204_s8 = scalar_lea.vmem [#allocation7], %s496_s24 }
  0x33   : > { %238 = vmatpush.bf16.msra.mxu0 %v514_v1  ;;  %s402_s7 = scalar_lea.hbm %s907_s3, %s511_s25  ;;  %s404_s9 = sshll.u32 %s204_s8, 4  ;;  %s405_s9 = int_to_ptr.vmem [resolvable:$true] %s404_s9 }
  0x34   : > { %s406_s10 = sshll.u32 %s402_s7, 4  ;;  %s392_s11 = scalar_lea.sflag [#allocation4], %s842_s5  ;;  %s407_s10 = int_to_ptr.hbm [resolvable:$true] %s406_s10 }
  0x35   : > { %s664_s20 = sshra.s32 %s407_s10, 4  ;;  %s665_s20 = int_to_ptr.hbm [resolvable:$true] %s664_s20 }
  0x36   : > { %505 = vmatmul.msk.bf16.vlgmr.msra.gmra.mxu0 %vm227_vm0, %v206_v2  ;;  %s666_s16 = scalar_lea.hbm %s665_s20, 8  ;;  %p671_p12 = scmp.lt.s32.totalorder %s665_s20, %s907_s3 }
  0x37   : > { %p667_p1 = scmp.ne.s32.totalorder %s665_s20, %s666_s16 }
  0x39   : > { %p668_p3 = pnand %p667_p1, %p811_p13 }
  0x3b   : > { %p669_p5 = pneg %p668_p3 }
  0xb3   : > { %v240_v4 = vpop.f32.mrf.mxu0 }
  0xb4   : > { %v241_v5 = vadd.f32 %v581_v3, %v240_v4 }
  0xb6   : > { %v251_v6 = vpack.c.bf16 %v241_v5, %v241_v5  ;;  %v244_v7 = vmul.f32 0.25, %v241_v5 }
  0xb8   : > { %364 = vrot.lane.b32.xlu2 %v251_v6, %s725_s30  ;;  %253 = vrot.lane.b32.xlu0 %v251_v6, %s726_s17  ;;  %v250_v8 = vpack.c.bf16 %v244_v7, %v244_v7  ;;  %s670_s17 = scalar_lea.hbm %s907_s3, 16 }
  0xb9   : > { %p672_p8 = scmp.lt.s32.totalorder %s670_s17, %s666_s16 }
  0xba   : > { %320 = vrot.lane.b32.xlu1 %v250_v8, %s727_s18 }
  0xbb   : > { %v242_v9 = vpop.f32.mrf.mxu0  ;;  %p673_p7 = por %p672_p8, %p671_p12 }
  0xbd   : > { %p674_p9 = pnand %p673_p7, %p669_p5 }
  0xc0   : > { %322 = vrot.lane.b32.xlu0 %v251_v6, %s728_s21 }
  0xc2   : > { %297 = vrot.lane.b32.xlu1 %v251_v6, %s729_s22 }
 0x112   : > { %v365_v14 = vpop.permute.xlu2 %364 }
 0x113   : > { %v370_v18 = vsel %vm302_vm2, %v365_v14, 0 }
 0x12a   : > { %v254_v10 = vpop.permute.xlu0 %253 }
 0x12b   : > { %v260_v11 = vsel %vm255_vm1, %v254_v10, 0 }
 0x12c   : > { %269 = vmatpush.bf16.xpose.msra.mxu1 %v260_v11  ;;  %v321_v12 = vpop.permute.xlu1 %320 }
 0x132   : > { %v323_v13 = vpop.permute.xlu0 %322 }
 0x133   : > { %506 = vmatmul.msk.bf16.vlgmr.msra.gmra.mxu1 %vm255_vm1, %v250_v8  ;;  %v328_v15 = vsel %vm255_vm1, %v323_v13, 0 }
 0x134   : > { %337 = vmatpush.bf16.xpose.msra.mxu3 %v328_v15  ;;  %v298_v16 = vpop.permute.xlu1 %297 }
 0x135   : > { %v304_v17 = vsel %vm302_vm2, %v298_v16, 0 }
 0x136   : > { %313 = vmatpush.bf16.msra.mxu2 %v304_v17 }
 0x13a   : > { %379 = vmatpush.bf16.msrb.mxu2 %v370_v18 }
 0x13b   : > { %508 = vmatmul.msk.bf16.vlgmr.msra.gmra.mxu3 %vm255_vm1, %v321_v12 }
 0x1b0   : > { %v271_v22 = vpop.f32.mrf.mxu1 }
 0x1b1   : > { %v275_v23 = vsel %vm249_vm3, -inf, %v271_v22 }
 0x1b2   : > { %v277_v24 = vsel %vm276_vm4, %v275_v23, -inf }
 0x1b3   : > { %v278_v25 = vrot.slane %v277_v24, 4 }
 0x1b5   : > { %v279_v26 = vmax.f32 %v277_v24, %v278_v25 }
 0x1b7   : > { %v280_v27 = vrot.slane %v279_v26, 2 }
 0x1b8   : > { %v273_v28 = vpop.f32.mrf.mxu1 }
 0x1b9   : > { %v281_v29 = vmax.f32 %v279_v26, %v280_v27 }
 0x1bb   : > { %v282_v30 = vrot.slane %v281_v29, 1 }
 0x1bd   : > { %v283_v31 = vmax.f32 %v281_v29, %v282_v30 }
 0x1be   : > { %v339_v32 = vpop.f32.mrf.mxu3 }
 0x1bf   : > { %v284_v33 = vsub.f32 %v275_v23, %v283_v31  ;;  %v343_v34 = vsel %vm249_vm3, -inf, %v339_v32 }
 0x1c0   : > { %v344_v35 = vsel %vm276_vm4, %v343_v34, -inf }
 0x1c1   : > { %v285_v36 = vmul.f32 1.442695, %v284_v33  ;;  %v345_v37 = vrot.slane %v344_v35, 4 }
 0x1c3   : > { %582 = vpow2.f32 %v285_v36  ;;  %v346_v38 = vmax.f32 %v344_v35, %v345_v37 }
 0x1c5   : > { %v347_v39 = vrot.slane %v346_v38, 2 }
 0x1c6   : > { %v341_v40 = vpop.f32.mrf.mxu3 }
 0x1c7   : > { %v348_v41 = vmax.f32 %v346_v38, %v347_v39 }
 0x1c9   : > { %v583_v42 = vpop.eup %582  ;;  %v349_v43 = vrot.slane %v348_v41, 1 }
 0x1ca   : > { %v287_v44 = vsel %vm276_vm4, %v583_v42, 0.0 }
 0x1cb   : > { %v288_v45 = vrot.slane %v287_v44, 4  ;;  %v350_v46 = vmax.f32 %v348_v41, %v349_v43 }
 0x1cd   : > { %v289_v47 = vadd.f32 %v288_v45, %v287_v44  ;;  %v351_v48 = vsub.f32 %v343_v34, %v350_v46 }
 0x1cf   : > { %v290_v49 = vrot.slane %v289_v47, 2  ;;  %v352_v50 = vmul.f32 1.442695, %v351_v48 }
 0x1d1   : > { %v291_v51 = vadd.f32 %v290_v49, %v289_v47  ;;  %584 = vpow2.f32 %v352_v50 }
 0x1d3   : > { %v292_v52 = vrot.slane %v291_v51, 1 }
 0x1d5   : > { %v293_v53 = vadd.f32 %v292_v52, %v291_v51 }
 0x1d7   : > { %v585_v54 = vpop.eup %584  ;;  %586 = vrcp.f32 %v293_v53 }
 0x1d8   : > { %v354_v55 = vsel %vm276_vm4, %v585_v54, 0.0 }
 0x1d9   : > { %v355_v56 = vrot.slane %v354_v55, 4 }
 0x1db   : > { %v356_v57 = vadd.f32 %v355_v56, %v354_v55 }
 0x1dd   : > { %v587_v58 = vpop.eup %586  ;;  %v357_v59 = vrot.slane %v356_v57, 2 }
 0x1de   : > { %v295_v60 = vmul.f32 %v587_v58, %v583_v42 }
 0x1df   : > { %v358_v61 = vadd.f32 %v357_v59, %v356_v57 }
 0x1e0   : > { %v296_v62 = vpack.c.bf16 %v295_v60, %v295_v60 }
 0x1e1   : > { %v359_v63 = vrot.slane %v358_v61, 1 }
 0x1e2   : > { %507 = vmatmul.msk.bf16.vlgmr.msra.gmra.mxu2 %vm276_vm4, %v296_v62 }
 0x1e3   : > { %v360_v0 = vadd.f32 %v359_v63, %v358_v61 }
 0x1e5   : > { %588 = vrcp.f32 %v360_v0 }
 0x1eb   : > { %v589_v1 = vpop.eup %588 }
 0x1ec   : > { %v362_v2 = vmul.f32 %v589_v1, %v585_v54 }
 0x1ee   : > { %v363_v3 = vpack.c.bf16 %v362_v2, %v362_v2 }
 0x1f2   : > { %509 = vmatmul.msk.bf16.vlgmr.msrb.gmra.mxu2 %vm276_vm4, %v363_v3 }
 0x265   : > { %v315_v4 = vpop.f32.mrf.mxu2 }
 0x26d   : > { %v317_v5 = vpop.f32.mrf.mxu2 }
 0x275   : > { %v381_v6 = vpop.f32.mrf.mxu2 }
 0x276   : > { %386 = vrot.lane.b32.xlu2 %v381_v6, %s730_s23 }
 0x27d   : > { %v383_v7 = vpop.f32.mrf.mxu2 }
 0x2d0   : > { %v387_v8 = vpop.permute.xlu2 %386 }
 0x2d1   : > { %v389_v9 = vsel %vm255_vm1, %v315_v4, %v387_v8 }
 0x2d2   : > { %390 = vst.msk [vmem:[%s204_s8] sm:$0xff] %vm227_vm0, %v389_v9 }
 0x2d3   : > { %677 = shalt.err (!%p674_p9)
}
 0x2d4   : > { %522 = dma.vmem_to_hbm [thread:$0]  (%p811_p13), %s405_s9, 128, %s407_s10, %s392_s11  }
 0x2d5 PF: > { %s418_s5 = sand.u32 1, %s708_s12   ;;  %p913_p10 = scmp.ge.s32.totalorder %s720_s15, 2 }
 0x2d6   : > { %s419_s22 = scalar_lea.sflag [#allocation4], %s418_s5 }
 0x2d7   : > { %p533_p11 = pnand %p913_p10, %p816_p4 }
 0x2d9   : > { %p534_p0 = pneg %p533_p11 }
 0x2db   : > { %703 = dma.done.wait (%p534_p0), %s419_s22, 128  }
 0x2dc   : > { %705 = vsyncadd (%p534_p0), %s419_s22, 4294967168  ;;  %p17_p2 = scmp.ge.s32.totalorder %s791_s26, 4   ;;  %s914_s12 = smov %s712_s13 }
 0x2dd   : > { %s915_s13 = smov %s716_s14  ;;  %s916_s14 = smov %s803_s29 }
 0x2de   : > { %s917_s15 = smov %s791_s26  ;;  %19 = sbr.rel (!%p17_p2) target bundleno = 6 (0x6), region = 81 }
 0x2e3   :  { %425 = vsyncpa [#allocation3], 1 }
 0x2e4   :  { %427 = vsyncpa [#allocation3 + $0x1], 1 }
 0x2e5   :  { %428 = vsyncpa [#allocation6], 1 }
 0x2e6   :  { %429 = vsyncpa [#allocation4], 1 }
 0x2e7   :  { %431 = vsyncpa [#allocation4 + $0x1], 1 }

</bundles_post_ra>
